<compile_context>
chip_gen: v5e
topology: v5e:2x2
jax: 0.10.0
libtpu: 0.0.40
codegen_flags: <defaults>
</compile_context>

<pallas_src>
import numpy as np
import jax
import jax.numpy as jnp
from jax.experimental import pallas as pl
from jax.experimental.pallas import tpu as pltpu


# ------------------------------ Pallas kernel ------------------------------
def _cse_phase_mul_kernel(img_ref, csm_ref, out_ref):
    """out[:, cb, p, s] = image[p, s] * csm[cb, s]   (complex, planar re/im).

    img_ref : VMEM (2, PH, Sblk)            re/im image planes (this S tile)
    csm_ref : VMEM (CB, 2, Sblk)            re/im coil maps (this coil block)
    out_ref : VMEM (2, CB, PH, Sblk)        re/im output planes
    """
    ir = img_ref[0]                       # (PH, Sblk)
    ii = img_ref[1]
    csm = csm_ref[...]                    # (CB, 2, Sblk)
    cr = csm[:, 0:1, :]                   # (CB, 1, Sblk) -> broadcast over PH
    ci = csm[:, 1:2, :]
    ir_b = ir[None, :, :]                 # (1, PH, Sblk)
    ii_b = ii[None, :, :]
    # complex multiply (ir + i*ii) * (cr + i*ci): pure VPU, lane-dense vregs
    out_ref[0] = ir_b * cr - ii_b * ci    # (CB, PH, Sblk)
    out_ref[1] = ir_b * ci + ii_b * cr


# --------------------------- block-size selection ---------------------------
def _pick_s_block(S, max_lanes=2048):
    """Largest multiple of 128 <= max_lanes that divides S; else full S."""
    if S % 128 != 0:
        return S                               # masked stores: perf only
    blk = min(S, max_lanes)
    blk -= blk % 128
    while blk > 128 and S % blk != 0:
        blk -= 128
    return blk if S % blk == 0 else S


def _pick_coil_block(BC, PH, s_blk, vmem_budget=8 << 20):
    """Coils per grid step: prefer an even number of blocks (>=2) for v7x's
    two TensorCores, but keep double-buffered per-step tiles under budget."""
    def step_bytes(cb):
        img = 2 * PH * s_blk * 4
        csm = cb * 2 * s_blk * 4
        out = 2 * cb * PH * s_blk * 4
        return 2 * (img + csm + out)           # x2: double buffering
    cb = BC
    if BC >= 2 and BC % 2 == 0:
        cb = BC // 2                           # 2 coil blocks -> one per TC
    while cb > 1 and step_bytes(cb) > vmem_budget:
        nd = cb - 1
        while nd > 1 and BC % nd != 0:
            nd -= 1
        cb = nd
    return cb


# ------------------------- core (planar re/im) path -------------------------
def cse_contradyn_phfix_forward_planar(image_ri, csm_ri):
    """Conversion-free path.

    image_ri : f32 (2, ph, d, h, w)        [0]=real, [1]=imag
    csm_ri   : f32 (b, ch, 2, d, h, w)     [..., 0, :, :, :]=real, [..., 1, ...]=imag
    returns  : f32 (2, b, ch, ph, d, h, w) packed re/im of image * csm
    """
    two, ph, d, h, w = image_ri.shape
    b, ch, two2, d2, h2, w2 = csm_ri.shape
    assert two == 2 and two2 == 2
    assert (d, h, w) == (d2, h2, w2), "image / csm spatial dims must match"

    S = d * h * w                  # flattened spatial -> lane axis
    BC = b * ch                    # flattened coil axis

    s_blk = _pick_s_block(S)
    cb = _pick_coil_block(BC, ph, s_blk)
    n_s = S // s_blk
    n_c = BC // cb

    img_flat = image_ri.reshape(2, ph, S)
    csm_flat = csm_ri.reshape(BC, 2, S)

    grid_spec = pltpu.PrefetchScalarGridSpec(
        num_scalar_prefetch=0,
        grid=(n_s, n_c),           # coil axis innermost -> image tile reused across coils
        in_specs=[
            # image tile: constant over the coil axis -> fetched once per S tile
            pl.BlockSpec((2, ph, s_blk), lambda s, c: (0, 0, s)),
            # csm tile: one coil block per step; last-two dims (2, s_blk) are
            # (full-dim, multiple of 128) -> lane-dense, unmasked
            pl.BlockSpec((cb, 2, s_blk), lambda s, c: (c, 0, s)),
        ],
        out_specs=pl.BlockSpec((2, cb, ph, s_blk), lambda s, c: (0, c, 0, s)),
    )

    out = pl.pallas_call(
        _cse_phase_mul_kernel,
        out_shape=jax.ShapeDtypeStruct((2, BC, ph, S), jnp.float32),
        grid_spec=grid_spec,
        compiler_params=pltpu.CompilerParams(
            # S tiling sequential; coil blocks independent -> shardable over 2 TCs
            dimension_semantics=("arbitrary", "parallel"),
        ),
    )(img_flat, csm_flat)

    return out.reshape(2, b, ch, ph, d, h, w)


# -------------------- complex64 convenience wrapper --------------------
def cse_contradyn_phfix_forward(image, csm):
    """API-parity wrapper (matches the PyTorch module's complex signature).

    NOTE: the split / recombine below reintroduce extra HBM passes; for
    performance, keep data planar and call cse_contradyn_phfix_forward_planar.
    """
    image_ri = jnp.stack(
        [jnp.real(image), jnp.imag(image)], axis=0).astype(jnp.float32)
    csm_ri = jnp.stack(
        [jnp.real(csm), jnp.imag(csm)], axis=2).astype(jnp.float32)
    out_ri = cse_contradyn_phfix_forward_planar(image_ri, csm_ri)
    return (out_ri[0] + 1j * out_ri[1]).astype(jnp.complex64)


# ---------------------------------- main ------------------------------------
if __name__ == "__main__":
    # small shapes consistent with the module: 8 phases, 2x4 coils, 2x16x16 volume
    PH, D, H, W = 8, 2, 16, 16
    B, CH = 2, 4

    key = jax.random.PRNGKey(0)
    k1, k2 = jax.random.split(key, 2)
    # planar re/im inputs (the conversion-free contract)
    image_ri = jax.random.normal(k1, (2, PH, D, H, W), dtype=jnp.float32)
    csm_ri = jax.random.normal(k2, (B, CH, 2, D, H, W), dtype=jnp.float32)

    out_ri = cse_contradyn_phfix_forward_planar(image_ri, csm_ri)
    out_ri = jax.block_until_ready(out_ri)
    assert out_ri.shape == (2, B, CH, PH, D, H, W), out_ri.shape

    # host-side reference with module semantics: image[None,None] * csm[:,:,None]
    img_np = np.asarray(image_ri)
    csm_np = np.asarray(csm_ri)
    img_c = img_np[0] + 1j * img_np[1]                      # (ph, d, h, w)
    csm_c = csm_np[:, :, 0] + 1j * csm_np[:, :, 1]          # (b, ch, d, h, w)
    ref = img_c[None, None] * csm_c[:, :, None]             # (b, ch, ph, d, h, w)

    out_np = np.asarray(out_ri)
    out_c = out_np[0] + 1j * out_np[1]
    np.testing.assert_allclose(out_c, ref, rtol=1e-5, atol=1e-5)

    # also exercise the complex64 convenience wrapper once
    out_complex = cse_contradyn_phfix_forward(
        jnp.asarray(img_c.astype(np.complex64)),
        jnp.asarray(csm_c.astype(np.complex64)))
    out_complex = jax.block_until_ready(out_complex)
    np.testing.assert_allclose(np.asarray(out_complex), ref, rtol=1e-5, atol=1e-5)

    print("KERNEL_OK")
</pallas_src>

<mosaic_0001>
module attributes {stable_mosaic.version = 11 : i64} {
  func.func @_cse_phase_mul_kernel(%arg0: i32, %arg1: i32, %arg2: memref<2x8x512xf32, #tpu.memory_space<vmem>>, %arg3: memref<4x2x512xf32, #tpu.memory_space<vmem>>, %arg4: memref<2x4x8x512xf32, #tpu.memory_space<vmem>>) attributes {dimension_semantics = [#tpu.dimension_semantics<arbitrary>, #tpu.dimension_semantics<parallel>], iteration_bounds = array<i64: 1, 2>, scalar_prefetch = 0 : i64, scratch_operands = 0 : i64, tpu.core_type = #tpu.core_type<tc>, window_params = [{transform_indices = @transform_0, window_bounds = array<i64: 2, 8, 512>}, {transform_indices = @transform_1, window_bounds = array<i64: 4, 2, 512>}, {transform_indices = @transform_2, window_bounds = array<i64: 2, 4, 8, 512>}]} {
    %c0 = arith.constant 0 : index
    %c0_0 = arith.constant 0 : index
    %c0_1 = arith.constant 0 : index
    %0 = vector.load %arg2[%c0, %c0_0, %c0_1] : memref<2x8x512xf32, #tpu.memory_space<vmem>>, vector<1x8x512xf32>
    %1 = vector.shape_cast %0 : vector<1x8x512xf32> to vector<8x512xf32>
    %c1 = arith.constant 1 : index
    %c0_2 = arith.constant 0 : index
    %c0_3 = arith.constant 0 : index
    %2 = vector.load %arg2[%c1, %c0_2, %c0_3] : memref<2x8x512xf32, #tpu.memory_space<vmem>>, vector<1x8x512xf32>
    %3 = vector.shape_cast %2 : vector<1x8x512xf32> to vector<8x512xf32>
    %c0_4 = arith.constant 0 : index
    %c0_5 = arith.constant 0 : index
    %c0_6 = arith.constant 0 : index
    %4 = vector.load %arg3[%c0_4, %c0_5, %c0_6] : memref<4x2x512xf32, #tpu.memory_space<vmem>>, vector<4x2x512xf32>
    %5 = vector.extract_strided_slice %4 {offsets = [0, 0, 0], sizes = [4, 1, 512], strides = [1, 1, 1]} : vector<4x2x512xf32> to vector<4x1x512xf32>
    %6 = vector.extract_strided_slice %4 {offsets = [0, 1, 0], sizes = [4, 1, 512], strides = [1, 1, 1]} : vector<4x2x512xf32> to vector<4x1x512xf32>
    %7 = vector.shape_cast %1 : vector<8x512xf32> to vector<1x8x512xf32>
    %8 = vector.shape_cast %3 : vector<8x512xf32> to vector<1x8x512xf32>
    %9 = vector.broadcast %7 : vector<1x8x512xf32> to vector<4x8x512xf32>
    %10 = vector.broadcast %5 : vector<4x1x512xf32> to vector<4x8x512xf32>
    %11 = arith.mulf %9, %10 : vector<4x8x512xf32>
    %12 = vector.broadcast %8 : vector<1x8x512xf32> to vector<4x8x512xf32>
    %13 = vector.broadcast %6 : vector<4x1x512xf32> to vector<4x8x512xf32>
    %14 = arith.mulf %12, %13 : vector<4x8x512xf32>
    %15 = arith.subf %11, %14 : vector<4x8x512xf32>
    %c0_7 = arith.constant 0 : index
    %c0_8 = arith.constant 0 : index
    %c0_9 = arith.constant 0 : index
    %c0_10 = arith.constant 0 : index
    %16 = vector.load %arg4[%c0_7, %c0_8, %c0_9, %c0_10] : memref<2x4x8x512xf32, #tpu.memory_space<vmem>>, vector<1x4x8x512xf32>
    %17 = vector.shape_cast %16 : vector<1x4x8x512xf32> to vector<4x8x512xf32>
    %18 = vector.shape_cast %15 : vector<4x8x512xf32> to vector<1x4x8x512xf32>
    tpu.vector_store %arg4[%c0_7, %c0_8, %c0_9, %c0_10], %18 {strides = array<i32>} : memref<2x4x8x512xf32, #tpu.memory_space<vmem>>, vector<1x4x8x512xf32>,
    %19 = vector.broadcast %7 : vector<1x8x512xf32> to vector<4x8x512xf32>
    %20 = vector.broadcast %6 : vector<4x1x512xf32> to vector<4x8x512xf32>
    %21 = arith.mulf %19, %20 : vector<4x8x512xf32>
    %22 = vector.broadcast %8 : vector<1x8x512xf32> to vector<4x8x512xf32>
    %23 = vector.broadcast %5 : vector<4x1x512xf32> to vector<4x8x512xf32>
    %24 = arith.mulf %22, %23 : vector<4x8x512xf32>
    %25 = arith.addf %21, %24 : vector<4x8x512xf32>
    %c1_11 = arith.constant 1 : index
    %c0_12 = arith.constant 0 : index
    %c0_13 = arith.constant 0 : index
    %c0_14 = arith.constant 0 : index
    %26 = vector.load %arg4[%c1_11, %c0_12, %c0_13, %c0_14] : memref<2x4x8x512xf32, #tpu.memory_space<vmem>>, vector<1x4x8x512xf32>
    %27 = vector.shape_cast %26 : vector<1x4x8x512xf32> to vector<4x8x512xf32>
    %28 = vector.shape_cast %25 : vector<4x8x512xf32> to vector<1x4x8x512xf32>
    tpu.vector_store %arg4[%c1_11, %c0_12, %c0_13, %c0_14], %28 {strides = array<i32>} : memref<2x4x8x512xf32, #tpu.memory_space<vmem>>, vector<1x4x8x512xf32>,
    return
  }
  func.func @transform_0(%arg0: i32, %arg1: i32) -> (i32, i32, i32) {
    %c0_i32 = arith.constant 0 : i32
    %c0_i32_0 = arith.constant 0 : i32
    %c0_i32_1 = arith.constant 0 : i32
    return %c0_i32, %c0_i32_0, %arg0 : i32, i32, i32
  }
  func.func @transform_1(%arg0: i32, %arg1: i32) -> (i32, i32, i32) {
    %c0_i32 = arith.constant 0 : i32
    %c0_i32_0 = arith.constant 0 : i32
    return %arg1, %c0_i32, %arg0 : i32, i32, i32
  }
  func.func @transform_2(%arg0: i32, %arg1: i32) -> (i32, i32, i32, i32) {
    %c0_i32 = arith.constant 0 : i32
    %c0_i32_0 = arith.constant 0 : i32
    %c0_i32_1 = arith.constant 0 : i32
    return %c0_i32, %arg1, %c0_i32_0, %arg0 : i32, i32, i32, i32
  }
}

</mosaic_0001>

<bundles_post_ra>
// kernel: tpu_custom_call.1
= control target key start
LH: loop header
LB: loop body
LE: loop exit
PB: predicated region body
PF: predicated region fallthrough
CT: control target
= control target key end

     0   :  { %7 = vsyncpa [#allocation3], 0  ;;  %s1275_s0 = inlined_call_operand.hbm [shape: f32[2,8,512], index: 0, kind: input, shape index: {}]   ;;  %s1276_s1 = inlined_call_operand.hbm [shape: f32[8,2,512], index: 1, kind: input, shape index: {}]   ;;  %s1277_s2 = inlined_call_operand.hbm [shape: f32[2,8,8,512], index: 2, kind: output, shape index: {}]  }
   0x1   :  { %8 = vsyncpa [#allocation6], 0 }
   0x2   :  { %10 = vsyncpa [#allocation6 + $0x1], 0 }
   0x3   :  { %11 = vsyncpa [#allocation4], 0 }
   0x4   :  { %13 = vsyncpa [#allocation4 + $0x1], 0  ;;  %s874_s9 = smov 0   ;;  %s876_s10 = smov 0  }
   0x5   :  { %s878_s11 = smov 0   ;;  %s880_s12 = smov 0  }
   0x6   :  { %s882_s13 = smov 0   ;;  %s884_s14 = smov 0  }
   0x7 LB: > { %s598_s15 = sadd.s32 4294967295, %s845_s14   ;;  %s599_s16 = sadd.s32 4294967294, %s845_s14   ;;  %s845_s14 = sphi %s884_s14, %s19_s14   ;;  %s841_s13 = sphi %s882_s13, %s1289_s13   ;;  %s837_s12 = sphi %s880_s12, %s1288_s12   ;;  %s833_s11 = sphi %s878_s11, %s1287_s11   ;;  %s829_s10 = sphi %s876_s10, %s1286_s10   ;;  %s825_s9 = sphi %s874_s9, %s1285_s9  }
   0x8   : > { %p79_p0 = scmp.ne.s32.totalorder %s829_s10, %s825_s9  ;;  %p908_p1 = scmp.eq.s32.totalorder %s598_s15, 0 }
   0x9   : > { %p912_p2 = scmp.eq.s32.totalorder %s598_s15, 1  ;;  %p111_p3 = scmp.eq.s32.totalorder %s599_s16, 1 }
   0xa   : > { %p918_p4 = por %p908_p1, %p79_p0  ;;  %p600_p5 = scmp.ge.s32.totalorder %s845_s14, 1 }
   0xb   : > { %p923_p6 = por %p111_p3, %p79_p0  ;;  %p118_p7 = scmp.lt.s32.totalorder %s845_s14, 3 }
   0xc   : > { %s132_s23 = sshll.u32 %s1275_s0, 4  ;;  %s847_s25 = smov [#allocation2]   ;;  %s133_s23 = int_to_ptr.hbm [resolvable:$true] %s132_s23 }
   0xd   : > { %p931_p8 = pnand %p600_p5, %p118_p7  ;;  %s134_s26 = sshll.u32 %s847_s25, 4  ;;  %s135_s26 = int_to_ptr.vmem [resolvable:$true] %s134_s26 }
   0xe   : > { %p602_p11 = scmp.ge.s32.totalorder %s845_s14, 2  ;;  %s848_s27 = smov 512  }
   0xf   : > { %p651_p9 = pneg %p931_p8  ;;  %s849_s28 = smov 32  }
  0x10   : > { %s28_s29 = sadd.s32 1, %s841_s13  ;;  %s66_s30 = sadd.s32 1, %s833_s11 }
  0x11   : > { %p652_p10 = pnand %p651_p9, %p908_p1  ;;  %p29_p12 = scmp.ge.s32.totalorder %s28_s29, 2 }
  0x12   : > { %p73_p13 = scmp.ne.s32.totalorder %s833_s11, %s829_s10  ;;  %p74_p0 = scmp.eq.s32.totalorder %s845_s14, 0 }
  0x13   : > { %654 = dma.hbm_to_vmem [thread:$0]  (!%p652_p10), %s133_s23, 1024, %s135_s26, [#allocation3], %s848_s27, %s848_s27, %s849_s28  }
  0x14   : > { %s1291_s29 = smov (%p29_p12, %s28_s29), 0  ;;  %p947_p3 = por %p74_p0, %p73_p13 }
  0x15   : > { %p953_p5 = por %p912_p2, %p73_p13  ;;  %s61_s5 = ssub.s32 %s841_s13, %s1291_s29 }
  0x16   : > { %p664_p7 = scmp.lt.s32.totalorder %s845_s14, 2  ;;  %p64_p9 = scmp.eq.s32.totalorder %s61_s5, 0 }
  0x17   : > { %s148_s6 = sand.u32 1, %s833_s11   ;;  %s634_s15 = sshll.u32 %s841_s13, 5 }
  0x18   : > { %s603_s7 = sshll.u32 %s148_s6, 5  ;;  %s160_s22 = scalar_lea.hbm %s1276_s1, %s634_s15 }
  0x19   : > { %s962_s8 = scalar_select %p64_p9, %s833_s11, %s66_s30  }
  0x1a   : > { %s152_s23 = scalar_lea.vmem [#allocation5], %s603_s7  ;;  %s161_s18 = sshll.u32 %s160_s22, 4  ;;  %s162_s18 = int_to_ptr.hbm [resolvable:$true] %s161_s18 }
  0x1b   : > { %s163_s25 = sshll.u32 %s152_s23, 4  ;;  %p656_p2 = pnand %p664_p7, %p947_p3  ;;  %s164_s25 = int_to_ptr.vmem [resolvable:$true] %s163_s25 }
  0x1c   : > { %s149_s26 = scalar_lea.sflag [#allocation6], %s148_s6  ;;  %s850_s27 = smov 128  }
  0x1d   : > { %s851_s28 = smov 8   ;;  %175 = sbr.rel (%p931_p8) target bundleno = 98 (0x62), region = 28 }
  0x1e   : > { %658 = dma.hbm_to_vmem [thread:$0]  (!%p656_p2), %s162_s18, 512, %s164_s25, %s149_s26, %s850_s27, %s850_s27, %s851_s28  }
  0x22   : > { %812 = dma.done.wait (%p908_p1), [#allocation3], 1024  }
  0x23   : > { %814 = vsyncadd (%p908_p1), [#allocation3], 4294966272  ;;  %s977_s30 = sand.u32 1, %s829_s10  }
  0x24   : > { %s609_s3 = sshll.u32 %s977_s30, 5  ;;  %s183_s5 = scalar_lea.sflag [#allocation6], %s977_s30 }
  0x25   : > { %s981_s6 = scalar_lea.vmem [#allocation5], %s609_s3 }
  0x26   : > { %816 = dma.done.wait (%p918_p4), %s183_s5, 512  }
  0x27   : > { %818 = vsyncadd (%p918_p4), %s183_s5, 4294966784  ;;  %s610_s24 = sshll.u32 %s977_s30, 8  ;;  %v222_v0 = vld [vmem:[%s981_s6] sm:$0xff]  ;;  %v993_v7 = vld [vmem:[#allocation2 + $0x8] sm:$0xff]  ;;  %s456_s19 = scalar_lea.sflag [#allocation4], %s977_s30 }
  0x28   : > { %v989_v1 = vld [vmem:[#allocation2] sm:$0xff]  ;;  %v230_v3 = vperm.slane %v222_v0, 0  ;;  %v294_v4 = vperm.slane %v222_v0, 1  ;;  %v231_v5 = vperm.slane %v222_v0, 2  ;;  %v295_v6 = vperm.slane %v222_v0, 3  ;;  %v995_v8 = vld [vmem:[#allocation2 + $0x28] sm:$0xff] }
  0x29   : > { %v991_v2 = vld [vmem:[#allocation2 + $0x20] sm:$0xff]  ;;  %v997_v9 = vld [vmem:[#allocation2 + $0x10] sm:$0xff]  ;;  %v232_v10 = vperm.slane %v222_v0, 4  ;;  %v296_v11 = vperm.slane %v222_v0, 5  ;;  %v233_v12 = vperm.slane %v222_v0, 6  ;;  %v1009_v18 = vld [vmem:[#allocation2 + $0x18] sm:$0xff] }
  0x2a   : > { %v999_v13 = vperm.slane %v230_v3, 0  ;;  %v1001_v14 = vperm.slane %v294_v4, 1  ;;  %v1003_v15 = vperm.slane %v231_v5, 0  ;;  %v1005_v16 = vperm.slane %v295_v6, 1  ;;  %v1007_v17 = vld [vmem:[#allocation2 + $0x30] sm:$0xff]  ;;  %v223_v23 = vld [vmem:[%s981_s6 + $0x8] sm:$0xff] }
  0x2b   : > { %v1011_v19 = vperm.slane %v232_v10, 0  ;;  %v1013_v20 = vperm.slane %v296_v11, 1  ;;  %v1015_v21 = vperm.slane %v233_v12, 0  ;;  %v297_v22 = vperm.slane %v222_v0, 7  ;;  %v1026_v28 = vld [vmem:[#allocation2 + $0x38] sm:$0xff]  ;;  %s1040_s17 = scalar_lea.vmem [#allocation7], %s610_s24 }
  0x2c   : > { %v278_v24 = vmul.f32 %v999_v13, %v989_v1  ;;  %v342_v25 = vmul.f32 %v1001_v14, %v991_v2  ;;  %v279_v26 = vmul.f32 %v1003_v15, %v993_v7  ;;  %v343_v27 = vmul.f32 %v1005_v16, %v995_v8  ;;  %v224_v49 = vld [vmem:[%s981_s6 + $0x10] sm:$0xff] }
  0x2d   : > { %v280_v29 = vmul.f32 %v1011_v19, %v997_v9  ;;  %v344_v30 = vmul.f32 %v1013_v20, %v1007_v17  ;;  %v281_v31 = vmul.f32 %v1015_v21, %v1009_v18  ;;  %v1034_v32 = vperm.slane %v297_v22, 1 }
  0x2e   : > { %v358_v33 = vsub.f32 %v278_v24, %v342_v25  ;;  %v359_v34 = vsub.f32 %v279_v26, %v343_v27  ;;  %v234_v35 = vperm.slane %v223_v23, 0  ;;  %v298_v36 = vperm.slane %v223_v23, 1 }
  0x2f   : > { %v360_v37 = vsub.f32 %v280_v29, %v344_v30  ;;  %v345_v38 = vmul.f32 %v1034_v32, %v1026_v28  ;;  %v235_v39 = vperm.slane %v223_v23, 2  ;;  %v299_v40 = vperm.slane %v223_v23, 3  ;;  %v225_v29 = vld [vmem:[%s981_s6 + $0x18] sm:$0xff] }
  0x30   : > { %374 = vst [vmem:[%s1040_s17] sm:$0xff] %v358_v33  ;;  %v1043_v41 = vperm.slane %v234_v35, 0  ;;  %v1045_v42 = vperm.slane %v298_v36, 1  ;;  %v236_v43 = vperm.slane %v223_v23, 4  ;;  %v300_v44 = vperm.slane %v223_v23, 5 }
  0x31   : > { %375 = vst [vmem:[%s1040_s17 + $0x8] sm:$0xff] %v359_v34  ;;  %v361_v45 = vsub.f32 %v281_v31, %v345_v38  ;;  %v1048_v46 = vperm.slane %v235_v39, 0  ;;  %v1050_v47 = vperm.slane %v299_v40, 1  ;;  %v237_v48 = vperm.slane %v223_v23, 6 }
  0x32   : > { %376 = vst [vmem:[%s1040_s17 + $0x10] sm:$0xff] %v360_v37  ;;  %v282_v50 = vmul.f32 %v1043_v41, %v989_v1  ;;  %v346_v51 = vmul.f32 %v1045_v42, %v991_v2  ;;  %v1058_v52 = vperm.slane %v236_v43, 0  ;;  %v1060_v53 = vperm.slane %v300_v44, 1 }
  0x33   : > { %377 = vst [vmem:[%s1040_s17 + $0x18] sm:$0xff] %v361_v45  ;;  %v283_v54 = vmul.f32 %v1048_v46, %v993_v7  ;;  %v347_v55 = vmul.f32 %v1050_v47, %v995_v8  ;;  %v1067_v56 = vperm.slane %v237_v48, 0  ;;  %v301_v57 = vperm.slane %v223_v23, 7 }
  0x34   : > { %v362_v58 = vsub.f32 %v282_v50, %v346_v51  ;;  %v284_v59 = vmul.f32 %v1058_v52, %v997_v9  ;;  %v348_v60 = vmul.f32 %v1060_v53, %v1007_v17  ;;  %v238_v61 = vperm.slane %v224_v49, 0 }
  0x35   : > { %v363_v62 = vsub.f32 %v283_v54, %v347_v55  ;;  %v285_v63 = vmul.f32 %v1067_v56, %v1009_v18  ;;  %v1075_v0 = vperm.slane %v301_v57, 1  ;;  %v302_v3 = vperm.slane %v224_v49, 1 }
  0x36   : > { %378 = vst [vmem:[%s1040_s17 + $0x20] sm:$0xff] %v362_v58  ;;  %v364_v4 = vsub.f32 %v284_v59, %v348_v60  ;;  %v1078_v5 = vperm.slane %v238_v61, 0  ;;  %v239_v6 = vperm.slane %v224_v49, 2  ;;  %v303_v10 = vperm.slane %v224_v49, 3 }
  0x37   : > { %379 = vst [vmem:[%s1040_s17 + $0x28] sm:$0xff] %v363_v62  ;;  %v349_v11 = vmul.f32 %v1075_v0, %v1026_v28  ;;  %v1083_v12 = vperm.slane %v302_v3, 1  ;;  %v240_v22 = vperm.slane %v224_v49, 4  ;;  %v304_v23 = vperm.slane %v224_v49, 5 }
  0x38   : > { %380 = vst [vmem:[%s1040_s17 + $0x30] sm:$0xff] %v364_v4  ;;  %v286_v24 = vmul.f32 %v1078_v5, %v989_v1  ;;  %v1088_v25 = vperm.slane %v239_v6, 0  ;;  %v1090_v26 = vperm.slane %v303_v10, 1  ;;  %v241_v27 = vperm.slane %v224_v49, 6 }
  0x39   : > { %v365_v30 = vsub.f32 %v285_v63, %v349_v11  ;;  %v350_v31 = vmul.f32 %v1083_v12, %v991_v2  ;;  %v1095_v33 = vperm.slane %v240_v22, 0  ;;  %v1097_v34 = vperm.slane %v304_v23, 1 }
  0x3a   : > { %v287_v35 = vmul.f32 %v1088_v25, %v993_v7  ;;  %v351_v36 = vmul.f32 %v1090_v26, %v995_v8  ;;  %v1103_v37 = vperm.slane %v241_v27, 0  ;;  %v305_v38 = vperm.slane %v224_v49, 7 }
  0x3b   : > { %381 = vst [vmem:[%s1040_s17 + $0x38] sm:$0xff] %v365_v30  ;;  %v366_v39 = vsub.f32 %v286_v24, %v350_v31  ;;  %v288_v40 = vmul.f32 %v1095_v33, %v997_v9  ;;  %v352_v43 = vmul.f32 %v1097_v34, %v1007_v17  ;;  %v242_v44 = vperm.slane %v225_v29, 0 }
  0x3c   : > { %v367_v45 = vsub.f32 %v287_v35, %v351_v36  ;;  %v289_v48 = vmul.f32 %v1103_v37, %v1009_v18  ;;  %v1112_v50 = vperm.slane %v305_v38, 1  ;;  %v306_v51 = vperm.slane %v225_v29, 1 }
  0x3d   : > { %382 = vst [vmem:[%s1040_s17 + $0x40] sm:$0xff] %v366_v39  ;;  %v368_v54 = vsub.f32 %v288_v40, %v352_v43  ;;  %v1115_v49 = vperm.slane %v242_v44, 0  ;;  %v243_v55 = vperm.slane %v225_v29, 2  ;;  %v307_v57 = vperm.slane %v225_v29, 3 }
  0x3e   : > { %383 = vst [vmem:[%s1040_s17 + $0x48] sm:$0xff] %v367_v45  ;;  %v353_v58 = vmul.f32 %v1112_v50, %v1026_v28  ;;  %v1120_v59 = vperm.slane %v306_v51, 1  ;;  %v244_v60 = vperm.slane %v225_v29, 4  ;;  %v308_v61 = vperm.slane %v225_v29, 5 }
  0x3f   : > { %384 = vst [vmem:[%s1040_s17 + $0x50] sm:$0xff] %v368_v54  ;;  %v290_v62 = vmul.f32 %v1115_v49, %v989_v1  ;;  %v1125_v63 = vperm.slane %v243_v55, 0  ;;  %v1127_v3 = vperm.slane %v307_v57, 1  ;;  %v245_v4 = vperm.slane %v225_v29, 6 }
  0x40   : > { %v369_v6 = vsub.f32 %v289_v48, %v353_v58  ;;  %v354_v10 = vmul.f32 %v1120_v59, %v991_v2  ;;  %v1131_v11 = vperm.slane %v244_v60, 0  ;;  %v1133_v22 = vperm.slane %v308_v61, 1 }
  0x41   : > { %v291_v23 = vmul.f32 %v1125_v63, %v993_v7  ;;  %v355_v24 = vmul.f32 %v1127_v3, %v995_v8  ;;  %v1139_v27 = vperm.slane %v245_v4, 0  ;;  %v309_v30 = vperm.slane %v225_v29, 7 }
  0x42   : > { %385 = vst [vmem:[%s1040_s17 + $0x58] sm:$0xff] %v369_v6  ;;  %v370_v31 = vsub.f32 %v290_v62, %v354_v10  ;;  %v292_v35 = vmul.f32 %v1131_v11, %v997_v9  ;;  %v356_v36 = vmul.f32 %v1133_v22, %v1007_v17  ;;  %v390_v38 = vmul.f32 %v1001_v14, %v989_v1 }
  0x43   : > { %v371_v39 = vsub.f32 %v291_v23, %v355_v24  ;;  %v293_v40 = vmul.f32 %v1139_v27, %v1009_v18  ;;  %v341_v43 = vperm.slane %v309_v30, 1  ;;  %v406_v29 = vmul.f32 %v999_v13, %v991_v2 }
  0x44   : > { %386 = vst [vmem:[%s1040_s17 + $0x60] sm:$0xff] %v370_v31  ;;  %v372_v44 = vsub.f32 %v292_v35, %v356_v36  ;;  %v391_v45 = vmul.f32 %v1005_v16, %v993_v7  ;;  %v407_v48 = vmul.f32 %v1003_v15, %v995_v8  ;;  %v392_v14 = vmul.f32 %v1013_v20, %v997_v9 }
  0x45   : > { %387 = vst [vmem:[%s1040_s17 + $0x68] sm:$0xff] %v371_v39  ;;  %v357_v51 = vmul.f32 %v341_v43, %v1026_v28  ;;  %v422_v54 = vadd.f32 %v406_v29, %v390_v38  ;;  %v408_v13 = vmul.f32 %v1011_v19, %v1007_v17  ;;  %v393_v55 = vmul.f32 %v1034_v32, %v1009_v18 }
  0x46   : > { %388 = vst [vmem:[%s1040_s17 + $0x70] sm:$0xff] %v372_v44  ;;  %v423_v16 = vadd.f32 %v407_v48, %v391_v45  ;;  %v409_v15 = vmul.f32 %v1015_v21, %v1026_v28  ;;  %v394_v20 = vmul.f32 %v1045_v42, %v989_v1  ;;  %v410_v57 = vmul.f32 %v1043_v41, %v991_v2 }
  0x47   : > { %v373_v58 = vsub.f32 %v293_v40, %v357_v51  ;;  %611 = vst [vmem:[%s1040_s17 + $0x80] sm:$0xff] %v422_v54  ;;  %v424_v60 = vadd.f32 %v408_v13, %v392_v14  ;;  %v395_v19 = vmul.f32 %v1050_v47, %v993_v7  ;;  %v411_v32 = vmul.f32 %v1048_v46, %v995_v8 }
  0x48   : > { %612 = vst [vmem:[%s1040_s17 + $0x88] sm:$0xff] %v423_v16  ;;  %v425_v61 = vadd.f32 %v409_v15, %v393_v55  ;;  %v426_v21 = vadd.f32 %v410_v57, %v394_v20  ;;  %v396_v42 = vmul.f32 %v1060_v53, %v997_v9  ;;  %v412_v41 = vmul.f32 %v1058_v52, %v1007_v17 }
  0x49   : > { %389 = vst [vmem:[%s1040_s17 + $0x78] sm:$0xff] %v373_v58  ;;  %v427_v62 = vadd.f32 %v411_v32, %v395_v19  ;;  %v397_v4 = vmul.f32 %v1075_v0, %v1009_v18  ;;  %v413_v47 = vmul.f32 %v1067_v56, %v1026_v28  ;;  %v398_v46 = vmul.f32 %v1083_v12, %v989_v1 }
  0x4a   : > { %613 = vst [vmem:[%s1040_s17 + $0x90] sm:$0xff] %v424_v60  ;;  %v428_v6 = vadd.f32 %v412_v41, %v396_v42  ;;  %v414_v53 = vmul.f32 %v1078_v5, %v991_v2  ;;  %v399_v52 = vmul.f32 %v1090_v26, %v993_v7  ;;  %v415_v10 = vmul.f32 %v1088_v25, %v995_v8 }
  0x4b   : > { %614 = vst [vmem:[%s1040_s17 + $0x98] sm:$0xff] %v425_v61  ;;  %v429_v0 = vadd.f32 %v413_v47, %v397_v4  ;;  %v400_v56 = vmul.f32 %v1097_v34, %v997_v9  ;;  %v416_v12 = vmul.f32 %v1095_v33, %v1007_v17  ;;  %v401_v23 = vmul.f32 %v1112_v50, %v1009_v18 }
  0x4c   : > { %615 = vst [vmem:[%s1040_s17 + $0xa0] sm:$0xff] %v426_v21  ;;  %v430_v5 = vadd.f32 %v414_v53, %v398_v46  ;;  %v417_v26 = vmul.f32 %v1103_v37, %v1026_v28  ;;  %v402_v25 = vmul.f32 %v1120_v59, %v989_v1  ;;  %v431_v24 = vadd.f32 %v415_v10, %v399_v52 }
  0x4d   : > { %616 = vst [vmem:[%s1040_s17 + $0xa8] sm:$0xff] %v427_v62  ;;  %v418_v34 = vmul.f32 %v1115_v49, %v991_v2  ;;  %v403_v33 = vmul.f32 %v1127_v3, %v993_v7  ;;  %v419_v50 = vmul.f32 %v1125_v63, %v995_v8  ;;  %v432_v37 = vadd.f32 %v416_v12, %v400_v56 }
  0x4e   : > { %617 = vst [vmem:[%s1040_s17 + $0xb0] sm:$0xff] %v428_v6  ;;  %v404_v1 = vmul.f32 %v1133_v22, %v997_v9  ;;  %v420_v59 = vmul.f32 %v1131_v11, %v1007_v17  ;;  %v433_v2 = vadd.f32 %v417_v26, %v401_v23  ;;  %v405_v7 = vmul.f32 %v341_v43, %v1009_v18 }
  0x4f   : > { %618 = vst [vmem:[%s1040_s17 + $0xb8] sm:$0xff] %v429_v0  ;;  %v421_v8 = vmul.f32 %v1139_v27, %v1026_v28  ;;  %v434_v49 = vadd.f32 %v418_v34, %v402_v25  ;;  %v435_v63 = vadd.f32 %v419_v50, %v403_v33 }
  0x50   : > { %619 = vst [vmem:[%s1040_s17 + $0xc0] sm:$0xff] %v430_v5  ;;  %v436_v3 = vadd.f32 %v420_v59, %v404_v1 }
  0x51   : > { %620 = vst [vmem:[%s1040_s17 + $0xc8] sm:$0xff] %v431_v24  ;;  %v437_v9 = vadd.f32 %v421_v8, %v405_v7 }
  0x52   : > { %621 = vst [vmem:[%s1040_s17 + $0xd0] sm:$0xff] %v432_v37 }
  0x53   : > { %622 = vst [vmem:[%s1040_s17 + $0xd8] sm:$0xff] %v433_v2 }
  0x54   : > { %623 = vst [vmem:[%s1040_s17 + $0xe0] sm:$0xff] %v434_v49 }
  0x55   : > { %624 = vst [vmem:[%s1040_s17 + $0xe8] sm:$0xff] %v435_v63 }
  0x56   : > { %625 = vst [vmem:[%s1040_s17 + $0xf0] sm:$0xff] %v436_v3 }
  0x57   : > { %626 = vst [vmem:[%s1040_s17 + $0xf8] sm:$0xff] %v437_v9 }
  0x58   : > { %s636_s7 = sshll.u32 %s837_s12, 7  ;;  %s481_s15 = sshll.u32 %s1040_s17, 4  ;;  %s482_s15 = int_to_ptr.vmem [resolvable:$true] %s481_s15 }
  0x59   : > { %s470_s22 = scalar_lea.hbm %s1277_s2, %s636_s7  ;;  %s852_s25 = smov 2048  }
  0x5a   : > { %s483_s23 = sshll.u32 %s470_s22, 4  ;;  %643 = sst [smem:[#allocation9]] (%p953_p5), %s852_s25  ;;  %s484_s23 = int_to_ptr.hbm [resolvable:$true] %s483_s23 }
  0x5b   : > { %s853_s18 = smov 4096   ;;  %s854_s26 = smov 4  }
  0x5c   : > { %644 = sst [smem:[#allocation9 + $0x1]] (%p953_p5), %s853_s18  ;;  %s855_s12 = smov 512  }
  0x5d   : > { %645 = sst [smem:[#allocation9 + $0x2]] (%p953_p5), %s854_s26  ;;  %s856_s27 = smov 32  }
  0x5e   : > { %646 = sst [smem:[#allocation9 + $0x3]] (%p953_p5), %s855_s12  ;;  %s857_s28 = smov [#allocation8]  }
  0x5f   : > { %647 = sst [smem:[#allocation9 + $0x4]] (%p953_p5), %s855_s12  ;;  %s858_s30 = smov 0  }
  0x60   : > { %648 = sst [smem:[#allocation9 + $0x5]] (%p953_p5), %s856_s27 }
  0x61   : > { %649 = dma.general (%p953_p5), %s482_s15, 4096, %s484_s23, %s456_s19, %s857_s28, [#allocation9], %s858_s30, 0  }
  0x62 PF: > { %s511_s3 = sand.u32 1, %s825_s9   ;;  %p660_p1 = pnand %p602_p11, %p923_p6 }
  0x63   : > { %s512_s5 = scalar_lea.sflag [#allocation4], %s511_s3 }
  0x64   : > { %p661_p4 = pneg %p660_p1 }
  0x66   : > { %820 = dma.done.wait (%p661_p4), %s512_s5, 4096  }
  0x67   : > { %822 = vsyncadd (%p661_p4), %s512_s5, 4294963200  ;;  %s19_s14 = sadd.s32 1, %s845_s14   ;;  %s1285_s9 = smov %s829_s10 }
  0x68   : > { %p16_p8 = scmp.ge.s32.totalorder %s19_s14, 4   ;;  %s1286_s10 = smov %s833_s11 }
  0x69   : > { %s1287_s11 = smov %s962_s8  ;;  %s1288_s12 = smov %s841_s13 }
  0x6a   : > { %s1289_s13 = smov %s1291_s29  ;;  %18 = sbr.rel (!%p16_p8) target bundleno = 7 (0x7), region = 86 }
  0x6f   :  { %518 = vsyncpa [#allocation3], 1 }
  0x70   :  { %520 = vsyncpa [#allocation3 + $0x1], 1 }
  0x71   :  { %521 = vsyncpa [#allocation6], 1 }
  0x72   :  { %523 = vsyncpa [#allocation6 + $0x1], 1 }
  0x73   :  { %524 = vsyncpa [#allocation4], 1 }
  0x74   :  { %526 = vsyncpa [#allocation4 + $0x1], 1 }

</bundles_post_ra>
